<compile_context>
chip_gen: v7x
topology: tpu7x:2x2x1
jax: 0.10.0
libtpu: 0.0.40
codegen_flags: <defaults>
</compile_context>

<pallas_src>
import functools

import jax
import jax.numpy as jnp
from jax.experimental import pallas as pl
from jax.experimental.pallas import tpu as pltpu


# ---------------------------------------------------------------------------
# tile-size helpers (byte-budgeted, tail-safe)
# ---------------------------------------------------------------------------
def _pick_row_tile(l, bytes_per_row, budget_bytes):
    """Largest multiple-of-8 divisor of `l` whose output block fits the budget.

    Falls back to the smallest multiple-of-8 divisor, then to the full extent
    (a full-extent block is always layout-legal)."""
    best = None
    for t in range(8, l + 1, 8):
        if l % t == 0 and t * bytes_per_row <= budget_bytes:
            best = t
    if best is not None:
        return best
    for t in range(8, l + 1, 8):
        if l % t == 0:
            return t
    return l


def _pick_emb_row_tile(l, e):
    """Row tile for the embedding kernel: a multiple of `e` that divides `l`,
    is a multiple of 8 (or the full extent), with <= 4 gather windows per
    channel per grid step (small static unroll, ~<=2 MiB blocks)."""
    le = l // e
    for k in range(min(4, le), 0, -1):
        if le % k == 0:
            t = e * k
            if t % 8 == 0 or t == l:
                return t
    return None


# ---------------------------------------------------------------------------
# Kernel 1: |i-j| embedding gather, emitted directly in channel layout
# ---------------------------------------------------------------------------
def _dist_emb_kernel(refl_ref, o_ref, *, seq_len, emb_dim, row_tile):
    """refl_ref: (LE, 2E, L) pre-tiled reflected table (see _build_refl_grp).
    o_ref:    (1, E, row_tile, L) block of the (1, E, L, L) output.

    Gather window i (one row of the |i-j| gather, i = ch*LE + g) fills the
    whole slab out[0, ch, g*E:(g+1)*E, :] and equals
    refl_grp[m % LE, m//LE : m//LE + E, :] with m = L-1-i.
    """
    l, e = seq_len, emb_dim
    le = l // e
    win0 = pl.program_id(0) * (row_tile // e)      # first window slot of block
    for ch in range(e):                            # static: e == 16 by default
        for w in range(row_tile // e):             # static: <= 4
            i = ch * le + win0 + w                 # gather-row ("window") index
            m = (l - 1) - i                        # offset into reflected table
            if le == 1:
                p, q0 = 0, m
            else:
                p, q0 = m % le, m // le
            # One contiguous sublane-dynamic slice == one (E, L) output slab;
            # the store target is static and lane-dense (minor dim = L).
            o_ref[0, ch, w * e:(w + 1) * e, :] = refl_ref[p, pl.ds(q0, e), :]


def _build_refl_grp(table_l, l, e):
    """Pre-tile the reflected distance table (tiny, 8*L^2 bytes) so that every
    gather window becomes a single contiguous sublane slice in the kernel.

      refl[m]                   = table[|m - (L-1)|]          (2L-1, E)
      refl_grp[p, q, r*E + e']  = refl[q*LE + p + r, e']      (LE, 2E, L)
    """
    le = l // e
    refl = jnp.concatenate([table_l[::-1], table_l[1:]], axis=0)      # (2L-1, E)
    refl_pad = jnp.concatenate(
        [refl, jnp.zeros((le, e), refl.dtype)], axis=0)               # (2L-1+LE, E)
    # refl_wide[m, r*E + e'] = refl_pad[m + r, e']   for r in [0, LE)
    refl_wide = jnp.concatenate(
        [refl_pad[r:r + 2 * l] for r in range(le)], axis=1)           # (2L, L)
    return refl_wide.reshape(2 * e, le, l).transpose(1, 0, 2)         # (LE, 2E, L)


# ---------------------------------------------------------------------------
# Kernel 2: native 4-D concat (pure copy, lane-dense, channel dim is major)
# ---------------------------------------------------------------------------
def _concat_kernel(x_ref, e_ref, o_ref, *, in_ch):
    o_ref[:, :in_ch] = x_ref[...]
    o_ref[:, in_ch:] = e_ref[...].astype(o_ref.dtype)


# ---------------------------------------------------------------------------
# Wrapper
# ---------------------------------------------------------------------------
def concat_dist_2d_embedding(inputs, emb_table):
    """JAX/Pallas equivalent of ConcatDist2dEmbedding.forward (NCHW)."""
    b, c, l, l2 = inputs.shape
    assert l == l2, "expects square spatial dims (seq_len x seq_len)"
    num, e = emb_table.shape
    # dist takes values in [0, L-1]; nn.Embedding would raise if num < L.
    assert num >= l, "embedding table smaller than the distance range [0, L-1]"

    table_l = emb_table[:l].astype(jnp.float32)   # only rows [0, L) reachable

    # ---- Kernel 1: reflected-table window-copy gather -> (1, E, L, L) ------
    tr1 = _pick_emb_row_tile(l, e) if (l >= e and l % e == 0) else None
    if tr1 is not None and 8 * l * l <= 4 * 1024 * 1024:
        refl_grp = _build_refl_grp(table_l, l, e)                     # tiny
        emb4 = pl.pallas_call(
            functools.partial(_dist_emb_kernel, seq_len=l, emb_dim=e,
                              row_tile=tr1),
            out_shape=jax.ShapeDtypeStruct((1, e, l, l), jnp.float32),
            grid=(l // tr1,),
            in_specs=[pl.BlockSpec(refl_grp.shape, lambda r: (0, 0, 0))],
            out_specs=pl.BlockSpec((1, e, tr1, l), lambda r: (0, 0, r, 0)),
            compiler_params=pltpu.CompilerParams(
                dimension_semantics=("parallel",)),
        )(refl_grp)
    else:
        # TODO(synk): shapes where E does not divide L (or very large L where
        # the pre-tiled reflected table would exceed ~4 MiB) fall back to a
        # plain-JAX gather for the tiny, batch-broadcast embedding block.
        pos = jnp.arange(l)
        dist = jnp.abs(pos[:, None] - pos[None, :]).reshape(-1)
        emb4 = jnp.take(table_l, dist, axis=0).reshape(1, e, l, l)

    # ---- Kernel 2: concat on NATIVE 4-D shapes ------------------------------
    tr2 = _pick_row_tile(l, bytes_per_row=(c + e) * l * 4,
                         budget_bytes=2 * 1024 * 1024)
    out = pl.pallas_call(
        functools.partial(_concat_kernel, in_ch=c),
        out_shape=jax.ShapeDtypeStruct((b, c + e, l, l), inputs.dtype),
        grid=(l // tr2, b),   # batch innermost: shared emb block stays resident
        in_specs=[
            pl.BlockSpec((1, c, tr2, l), lambda r, bi: (bi, 0, r, 0)),
            pl.BlockSpec((1, e, tr2, l), lambda r, bi: (0, 0, r, 0)),
        ],
        out_specs=pl.BlockSpec((1, c + e, tr2, l), lambda r, bi: (bi, 0, r, 0)),
        compiler_params=pltpu.CompilerParams(
            dimension_semantics=("parallel", "parallel")),
    )(inputs, emb4)
    return out


if __name__ == "__main__":
    B, C, L = 2, 4, 16          # small shapes consistent with the module
    NUM, OUT = 512, 16          # nn.Embedding(512, 16)

    key = jax.random.PRNGKey(0)
    kx, kw = jax.random.split(key)
    x = jax.random.normal(kx, (B, C, L, L), dtype=jnp.float32)
    # nn.Embedding default init ~ N(0, 1); deterministic synthetic weights.
    emb_table = jax.random.normal(kw, (NUM, OUT), dtype=jnp.float32)

    y = jax.block_until_ready(concat_dist_2d_embedding(x, emb_table))

    # Pure-JAX reference mirroring the PyTorch forward exactly (including the
    # raw row-major `.view(1, -1, L, L)` on the (1, L*L, E) gather).
    pos = jnp.arange(L)[:, None]
    m1 = jnp.tile(pos, (1, L))
    dist = jnp.abs(m1 - m1.T)
    emb_ref = emb_table[dist.reshape(-1)].reshape(1, -1, L, L)
    ref = jnp.concatenate([x, jnp.tile(emb_ref, (B, 1, 1, 1))], axis=1)

    assert y.shape == (B, C + OUT, L, L), y.shape
    assert jnp.allclose(y, ref, atol=1e-5), float(jnp.max(jnp.abs(y - ref)))
    print("KERNEL_OK")
</pallas_src>

<mosaic_0001>
module attributes {stable_mosaic.version = 11 : i64} {
  func.func @_dist_emb_kernel(%arg0: i32, %arg1: memref<1x32x16xf32, #tpu.memory_space<vmem>>, %arg2: memref<1x16x16x16xf32, #tpu.memory_space<vmem>>) attributes {dimension_semantics = [#tpu.dimension_semantics<parallel>], iteration_bounds = array<i64: 1>, scalar_prefetch = 0 : i64, scratch_operands = 0 : i64, tpu.core_type = #tpu.core_type<tc>, window_params = [{pipeline_mode = #tpu.pipeline_mode<synchronous>, transform_indices = @transform_0, window_bounds = array<i64: 1, 32, 16>}, {transform_indices = @transform_1, window_bounds = array<i64: 1, 16, 16, 16>}]} {
    %c1_i32 = arith.constant 1 : i32
    %0 = arith.muli %arg0, %c1_i32 : i32
    %c0_i32 = arith.constant 0 : i32
    %1 = arith.addi %c0_i32, %0 : i32
    %c0_i32_0 = arith.constant 0 : i32
    %2 = arith.addi %1, %c0_i32_0 : i32
    %c15_i32 = arith.constant 15 : i32
    %3 = arith.subi %c15_i32, %2 : i32
    %c0 = arith.constant 0 : index
    %4 = arith.index_cast %3 : i32 to index
    %c0_1 = arith.constant 0 : index
    %5 = vector.load %arg1[%c0, %4, %c0_1] : memref<1x32x16xf32, #tpu.memory_space<vmem>>, vector<1x16x16xf32>
    %6 = vector.shape_cast %5 : vector<1x16x16xf32> to vector<16x16xf32>
    %c0_2 = arith.constant 0 : index
    %c0_3 = arith.constant 0 : index
    %c0_4 = arith.constant 0 : index
    %c0_5 = arith.constant 0 : index
    %7 = vector.load %arg2[%c0_2, %c0_3, %c0_4, %c0_5] : memref<1x16x16x16xf32, #tpu.memory_space<vmem>>, vector<1x1x16x16xf32>
    %8 = vector.shape_cast %7 : vector<1x1x16x16xf32> to vector<16x16xf32>
    %9 = vector.shape_cast %6 : vector<16x16xf32> to vector<1x1x16x16xf32>
    tpu.vector_store %arg2[%c0_2, %c0_3, %c0_4, %c0_5], %9 {strides = array<i32>} : memref<1x16x16x16xf32, #tpu.memory_space<vmem>>, vector<1x1x16x16xf32>,
    %c1_i32_6 = arith.constant 1 : i32
    %10 = arith.addi %c1_i32_6, %0 : i32
    %c0_i32_7 = arith.constant 0 : i32
    %11 = arith.addi %10, %c0_i32_7 : i32
    %c15_i32_8 = arith.constant 15 : i32
    %12 = arith.subi %c15_i32_8, %11 : i32
    %c0_9 = arith.constant 0 : index
    %13 = arith.index_cast %12 : i32 to index
    %c0_10 = arith.constant 0 : index
    %14 = vector.load %arg1[%c0_9, %13, %c0_10] : memref<1x32x16xf32, #tpu.memory_space<vmem>>, vector<1x16x16xf32>
    %15 = vector.shape_cast %14 : vector<1x16x16xf32> to vector<16x16xf32>
    %c0_11 = arith.constant 0 : index
    %c1 = arith.constant 1 : index
    %c0_12 = arith.constant 0 : index
    %c0_13 = arith.constant 0 : index
    %16 = vector.load %arg2[%c0_11, %c1, %c0_12, %c0_13] : memref<1x16x16x16xf32, #tpu.memory_space<vmem>>, vector<1x1x16x16xf32>
    %17 = vector.shape_cast %16 : vector<1x1x16x16xf32> to vector<16x16xf32>
    %18 = vector.shape_cast %15 : vector<16x16xf32> to vector<1x1x16x16xf32>
    tpu.vector_store %arg2[%c0_11, %c1, %c0_12, %c0_13], %18 {strides = array<i32>} : memref<1x16x16x16xf32, #tpu.memory_space<vmem>>, vector<1x1x16x16xf32>,
    %c2_i32 = arith.constant 2 : i32
    %19 = arith.addi %c2_i32, %0 : i32
    %c0_i32_14 = arith.constant 0 : i32
    %20 = arith.addi %19, %c0_i32_14 : i32
    %c15_i32_15 = arith.constant 15 : i32
    %21 = arith.subi %c15_i32_15, %20 : i32
    %c0_16 = arith.constant 0 : index
    %22 = arith.index_cast %21 : i32 to index
    %c0_17 = arith.constant 0 : index
    %23 = vector.load %arg1[%c0_16, %22, %c0_17] : memref<1x32x16xf32, #tpu.memory_space<vmem>>, vector<1x16x16xf32>
    %24 = vector.shape_cast %23 : vector<1x16x16xf32> to vector<16x16xf32>
    %c0_18 = arith.constant 0 : index
    %c2 = arith.constant 2 : index
    %c0_19 = arith.constant 0 : index
    %c0_20 = arith.constant 0 : index
    %25 = vector.load %arg2[%c0_18, %c2, %c0_19, %c0_20] : memref<1x16x16x16xf32, #tpu.memory_space<vmem>>, vector<1x1x16x16xf32>
    %26 = vector.shape_cast %25 : vector<1x1x16x16xf32> to vector<16x16xf32>
    %27 = vector.shape_cast %24 : vector<16x16xf32> to vector<1x1x16x16xf32>
    tpu.vector_store %arg2[%c0_18, %c2, %c0_19, %c0_20], %27 {strides = array<i32>} : memref<1x16x16x16xf32, #tpu.memory_space<vmem>>, vector<1x1x16x16xf32>,
    %c3_i32 = arith.constant 3 : i32
    %28 = arith.addi %c3_i32, %0 : i32
    %c0_i32_21 = arith.constant 0 : i32
    %29 = arith.addi %28, %c0_i32_21 : i32
    %c15_i32_22 = arith.constant 15 : i32
    %30 = arith.subi %c15_i32_22, %29 : i32
    %c0_23 = arith.constant 0 : index
    %31 = arith.index_cast %30 : i32 to index
    %c0_24 = arith.constant 0 : index
    %32 = vector.load %arg1[%c0_23, %31, %c0_24] : memref<1x32x16xf32, #tpu.memory_space<vmem>>, vector<1x16x16xf32>
    %33 = vector.shape_cast %32 : vector<1x16x16xf32> to vector<16x16xf32>
    %c0_25 = arith.constant 0 : index
    %c3 = arith.constant 3 : index
    %c0_26 = arith.constant 0 : index
    %c0_27 = arith.constant 0 : index
    %34 = vector.load %arg2[%c0_25, %c3, %c0_26, %c0_27] : memref<1x16x16x16xf32, #tpu.memory_space<vmem>>, vector<1x1x16x16xf32>
    %35 = vector.shape_cast %34 : vector<1x1x16x16xf32> to vector<16x16xf32>
    %36 = vector.shape_cast %33 : vector<16x16xf32> to vector<1x1x16x16xf32>
    tpu.vector_store %arg2[%c0_25, %c3, %c0_26, %c0_27], %36 {strides = array<i32>} : memref<1x16x16x16xf32, #tpu.memory_space<vmem>>, vector<1x1x16x16xf32>,
    %c4_i32 = arith.constant 4 : i32
    %37 = arith.addi %c4_i32, %0 : i32
    %c0_i32_28 = arith.constant 0 : i32
    %38 = arith.addi %37, %c0_i32_28 : i32
    %c15_i32_29 = arith.constant 15 : i32
    %39 = arith.subi %c15_i32_29, %38 : i32
    %c0_30 = arith.constant 0 : index
    %40 = arith.index_cast %39 : i32 to index
    %c0_31 = arith.constant 0 : index
    %41 = vector.load %arg1[%c0_30, %40, %c0_31] : memref<1x32x16xf32, #tpu.memory_space<vmem>>, vector<1x16x16xf32>
    %42 = vector.shape_cast %41 : vector<1x16x16xf32> to vector<16x16xf32>
    %c0_32 = arith.constant 0 : index
    %c4 = arith.constant 4 : index
    %c0_33 = arith.constant 0 : index
    %c0_34 = arith.constant 0 : index
    %43 = vector.load %arg2[%c0_32, %c4, %c0_33, %c0_34] : memref<1x16x16x16xf32, #tpu.memory_space<vmem>>, vector<1x1x16x16xf32>
    %44 = vector.shape_cast %43 : vector<1x1x16x16xf32> to vector<16x16xf32>
    %45 = vector.shape_cast %42 : vector<16x16xf32> to vector<1x1x16x16xf32>
    tpu.vector_store %arg2[%c0_32, %c4, %c0_33, %c0_34], %45 {strides = array<i32>} : memref<1x16x16x16xf32, #tpu.memory_space<vmem>>, vector<1x1x16x16xf32>,
    %c5_i32 = arith.constant 5 : i32
    %46 = arith.addi %c5_i32, %0 : i32
    %c0_i32_35 = arith.constant 0 : i32
    %47 = arith.addi %46, %c0_i32_35 : i32
    %c15_i32_36 = arith.constant 15 : i32
    %48 = arith.subi %c15_i32_36, %47 : i32
    %c0_37 = arith.constant 0 : index
    %49 = arith.index_cast %48 : i32 to index
    %c0_38 = arith.constant 0 : index
    %50 = vector.load %arg1[%c0_37, %49, %c0_38] : memref<1x32x16xf32, #tpu.memory_space<vmem>>, vector<1x16x16xf32>
    %51 = vector.shape_cast %50 : vector<1x16x16xf32> to vector<16x16xf32>
    %c0_39 = arith.constant 0 : index
    %c5 = arith.constant 5 : index
    %c0_40 = arith.constant 0 : index
    %c0_41 = arith.constant 0 : index
    %52 = vector.load %arg2[%c0_39, %c5, %c0_40, %c0_41] : memref<1x16x16x16xf32, #tpu.memory_space<vmem>>, vector<1x1x16x16xf32>
    %53 = vector.shape_cast %52 : vector<1x1x16x16xf32> to vector<16x16xf32>
    %54 = vector.shape_cast %51 : vector<16x16xf32> to vector<1x1x16x16xf32>
    tpu.vector_store %arg2[%c0_39, %c5, %c0_40, %c0_41], %54 {strides = array<i32>} : memref<1x16x16x16xf32, #tpu.memory_space<vmem>>, vector<1x1x16x16xf32>,
    %c6_i32 = arith.constant 6 : i32
    %55 = arith.addi %c6_i32, %0 : i32
    %c0_i32_42 = arith.constant 0 : i32
    %56 = arith.addi %55, %c0_i32_42 : i32
    %c15_i32_43 = arith.constant 15 : i32
    %57 = arith.subi %c15_i32_43, %56 : i32
    %c0_44 = arith.constant 0 : index
    %58 = arith.index_cast %57 : i32 to index
    %c0_45 = arith.constant 0 : index
    %59 = vector.load %arg1[%c0_44, %58, %c0_45] : memref<1x32x16xf32, #tpu.memory_space<vmem>>, vector<1x16x16xf32>
    %60 = vector.shape_cast %59 : vector<1x16x16xf32> to vector<16x16xf32>
    %c0_46 = arith.constant 0 : index
    %c6 = arith.constant 6 : index
    %c0_47 = arith.constant 0 : index
    %c0_48 = arith.constant 0 : index
    %61 = vector.load %arg2[%c0_46, %c6, %c0_47, %c0_48] : memref<1x16x16x16xf32, #tpu.memory_space<vmem>>, vector<1x1x16x16xf32>
    %62 = vector.shape_cast %61 : vector<1x1x16x16xf32> to vector<16x16xf32>
    %63 = vector.shape_cast %60 : vector<16x16xf32> to vector<1x1x16x16xf32>
    tpu.vector_store %arg2[%c0_46, %c6, %c0_47, %c0_48], %63 {strides = array<i32>} : memref<1x16x16x16xf32, #tpu.memory_space<vmem>>, vector<1x1x16x16xf32>,
    %c7_i32 = arith.constant 7 : i32
    %64 = arith.addi %c7_i32, %0 : i32
    %c0_i32_49 = arith.constant 0 : i32
    %65 = arith.addi %64, %c0_i32_49 : i32
    %c15_i32_50 = arith.constant 15 : i32
    %66 = arith.subi %c15_i32_50, %65 : i32
    %c0_51 = arith.constant 0 : index
    %67 = arith.index_cast %66 : i32 to index
    %c0_52 = arith.constant 0 : index
    %68 = vector.load %arg1[%c0_51, %67, %c0_52] : memref<1x32x16xf32, #tpu.memory_space<vmem>>, vector<1x16x16xf32>
    %69 = vector.shape_cast %68 : vector<1x16x16xf32> to vector<16x16xf32>
    %c0_53 = arith.constant 0 : index
    %c7 = arith.constant 7 : index
    %c0_54 = arith.constant 0 : index
    %c0_55 = arith.constant 0 : index
    %70 = vector.load %arg2[%c0_53, %c7, %c0_54, %c0_55] : memref<1x16x16x16xf32, #tpu.memory_space<vmem>>, vector<1x1x16x16xf32>
    %71 = vector.shape_cast %70 : vector<1x1x16x16xf32> to vector<16x16xf32>
    %72 = vector.shape_cast %69 : vector<16x16xf32> to vector<1x1x16x16xf32>
    tpu.vector_store %arg2[%c0_53, %c7, %c0_54, %c0_55], %72 {strides = array<i32>} : memref<1x16x16x16xf32, #tpu.memory_space<vmem>>, vector<1x1x16x16xf32>,
    %c8_i32 = arith.constant 8 : i32
    %73 = arith.addi %c8_i32, %0 : i32
    %c0_i32_56 = arith.constant 0 : i32
    %74 = arith.addi %73, %c0_i32_56 : i32
    %c15_i32_57 = arith.constant 15 : i32
    %75 = arith.subi %c15_i32_57, %74 : i32
    %c0_58 = arith.constant 0 : index
    %76 = arith.index_cast %75 : i32 to index
    %c0_59 = arith.constant 0 : index
    %77 = vector.load %arg1[%c0_58, %76, %c0_59] : memref<1x32x16xf32, #tpu.memory_space<vmem>>, vector<1x16x16xf32>
    %78 = vector.shape_cast %77 : vector<1x16x16xf32> to vector<16x16xf32>
    %c0_60 = arith.constant 0 : index
    %c8 = arith.constant 8 : index
    %c0_61 = arith.constant 0 : index
    %c0_62 = arith.constant 0 : index
    %79 = vector.load %arg2[%c0_60, %c8, %c0_61, %c0_62] : memref<1x16x16x16xf32, #tpu.memory_space<vmem>>, vector<1x1x16x16xf32>
    %80 = vector.shape_cast %79 : vector<1x1x16x16xf32> to vector<16x16xf32>
    %81 = vector.shape_cast %78 : vector<16x16xf32> to vector<1x1x16x16xf32>
    tpu.vector_store %arg2[%c0_60, %c8, %c0_61, %c0_62], %81 {strides = array<i32>} : memref<1x16x16x16xf32, #tpu.memory_space<vmem>>, vector<1x1x16x16xf32>,
    %c9_i32 = arith.constant 9 : i32
    %82 = arith.addi %c9_i32, %0 : i32
    %c0_i32_63 = arith.constant 0 : i32
    %83 = arith.addi %82, %c0_i32_63 : i32
    %c15_i32_64 = arith.constant 15 : i32
    %84 = arith.subi %c15_i32_64, %83 : i32
    %c0_65 = arith.constant 0 : index
    %85 = arith.index_cast %84 : i32 to index
    %c0_66 = arith.constant 0 : index
    %86 = vector.load %arg1[%c0_65, %85, %c0_66] : memref<1x32x16xf32, #tpu.memory_space<vmem>>, vector<1x16x16xf32>
    %87 = vector.shape_cast %86 : vector<1x16x16xf32> to vector<16x16xf32>
    %c0_67 = arith.constant 0 : index
    %c9 = arith.constant 9 : index
    %c0_68 = arith.constant 0 : index
    %c0_69 = arith.constant 0 : index
    %88 = vector.load %arg2[%c0_67, %c9, %c0_68, %c0_69] : memref<1x16x16x16xf32, #tpu.memory_space<vmem>>, vector<1x1x16x16xf32>
    %89 = vector.shape_cast %88 : vector<1x1x16x16xf32> to vector<16x16xf32>
    %90 = vector.shape_cast %87 : vector<16x16xf32> to vector<1x1x16x16xf32>
    tpu.vector_store %arg2[%c0_67, %c9, %c0_68, %c0_69], %90 {strides = array<i32>} : memref<1x16x16x16xf32, #tpu.memory_space<vmem>>, vector<1x1x16x16xf32>,
    %c10_i32 = arith.constant 10 : i32
    %91 = arith.addi %c10_i32, %0 : i32
    %c0_i32_70 = arith.constant 0 : i32
    %92 = arith.addi %91, %c0_i32_70 : i32
    %c15_i32_71 = arith.constant 15 : i32
    %93 = arith.subi %c15_i32_71, %92 : i32
    %c0_72 = arith.constant 0 : index
    %94 = arith.index_cast %93 : i32 to index
    %c0_73 = arith.constant 0 : index
    %95 = vector.load %arg1[%c0_72, %94, %c0_73] : memref<1x32x16xf32, #tpu.memory_space<vmem>>, vector<1x16x16xf32>
    %96 = vector.shape_cast %95 : vector<1x16x16xf32> to vector<16x16xf32>
    %c0_74 = arith.constant 0 : index
    %c10 = arith.constant 10 : index
    %c0_75 = arith.constant 0 : index
    %c0_76 = arith.constant 0 : index
    %97 = vector.load %arg2[%c0_74, %c10, %c0_75, %c0_76] : memref<1x16x16x16xf32, #tpu.memory_space<vmem>>, vector<1x1x16x16xf32>
    %98 = vector.shape_cast %97 : vector<1x1x16x16xf32> to vector<16x16xf32>
    %99 = vector.shape_cast %96 : vector<16x16xf32> to vector<1x1x16x16xf32>
    tpu.vector_store %arg2[%c0_74, %c10, %c0_75, %c0_76], %99 {strides = array<i32>} : memref<1x16x16x16xf32, #tpu.memory_space<vmem>>, vector<1x1x16x16xf32>,
    %c11_i32 = arith.constant 11 : i32
    %100 = arith.addi %c11_i32, %0 : i32
    %c0_i32_77 = arith.constant 0 : i32
    %101 = arith.addi %100, %c0_i32_77 : i32
    %c15_i32_78 = arith.constant 15 : i32
    %102 = arith.subi %c15_i32_78, %101 : i32
    %c0_79 = arith.constant 0 : index
    %103 = arith.index_cast %102 : i32 to index
    %c0_80 = arith.constant 0 : index
    %104 = vector.load %arg1[%c0_79, %103, %c0_80] : memref<1x32x16xf32, #tpu.memory_space<vmem>>, vector<1x16x16xf32>
    %105 = vector.shape_cast %104 : vector<1x16x16xf32> to vector<16x16xf32>
    %c0_81 = arith.constant 0 : index
    %c11 = arith.constant 11 : index
    %c0_82 = arith.constant 0 : index
    %c0_83 = arith.constant 0 : index
    %106 = vector.load %arg2[%c0_81, %c11, %c0_82, %c0_83] : memref<1x16x16x16xf32, #tpu.memory_space<vmem>>, vector<1x1x16x16xf32>
    %107 = vector.shape_cast %106 : vector<1x1x16x16xf32> to vector<16x16xf32>
    %108 = vector.shape_cast %105 : vector<16x16xf32> to vector<1x1x16x16xf32>
    tpu.vector_store %arg2[%c0_81, %c11, %c0_82, %c0_83], %108 {strides = array<i32>} : memref<1x16x16x16xf32, #tpu.memory_space<vmem>>, vector<1x1x16x16xf32>,
    %c12_i32 = arith.constant 12 : i32
    %109 = arith.addi %c12_i32, %0 : i32
    %c0_i32_84 = arith.constant 0 : i32
    %110 = arith.addi %109, %c0_i32_84 : i32
    %c15_i32_85 = arith.constant 15 : i32
    %111 = arith.subi %c15_i32_85, %110 : i32
    %c0_86 = arith.constant 0 : index
    %112 = arith.index_cast %111 : i32 to index
    %c0_87 = arith.constant 0 : index
    %113 = vector.load %arg1[%c0_86, %112, %c0_87] : memref<1x32x16xf32, #tpu.memory_space<vmem>>, vector<1x16x16xf32>
    %114 = vector.shape_cast %113 : vector<1x16x16xf32> to vector<16x16xf32>
    %c0_88 = arith.constant 0 : index
    %c12 = arith.constant 12 : index
    %c0_89 = arith.constant 0 : index
    %c0_90 = arith.constant 0 : index
    %115 = vector.load %arg2[%c0_88, %c12, %c0_89, %c0_90] : memref<1x16x16x16xf32, #tpu.memory_space<vmem>>, vector<1x1x16x16xf32>
    %116 = vector.shape_cast %115 : vector<1x1x16x16xf32> to vector<16x16xf32>
    %117 = vector.shape_cast %114 : vector<16x16xf32> to vector<1x1x16x16xf32>
    tpu.vector_store %arg2[%c0_88, %c12, %c0_89, %c0_90], %117 {strides = array<i32>} : memref<1x16x16x16xf32, #tpu.memory_space<vmem>>, vector<1x1x16x16xf32>,
    %c13_i32 = arith.constant 13 : i32
    %118 = arith.addi %c13_i32, %0 : i32
    %c0_i32_91 = arith.constant 0 : i32
    %119 = arith.addi %118, %c0_i32_91 : i32
    %c15_i32_92 = arith.constant 15 : i32
    %120 = arith.subi %c15_i32_92, %119 : i32
    %c0_93 = arith.constant 0 : index
    %121 = arith.index_cast %120 : i32 to index
    %c0_94 = arith.constant 0 : index
    %122 = vector.load %arg1[%c0_93, %121, %c0_94] : memref<1x32x16xf32, #tpu.memory_space<vmem>>, vector<1x16x16xf32>
    %123 = vector.shape_cast %122 : vector<1x16x16xf32> to vector<16x16xf32>
    %c0_95 = arith.constant 0 : index
    %c13 = arith.constant 13 : index
    %c0_96 = arith.constant 0 : index
    %c0_97 = arith.constant 0 : index
    %124 = vector.load %arg2[%c0_95, %c13, %c0_96, %c0_97] : memref<1x16x16x16xf32, #tpu.memory_space<vmem>>, vector<1x1x16x16xf32>
    %125 = vector.shape_cast %124 : vector<1x1x16x16xf32> to vector<16x16xf32>
    %126 = vector.shape_cast %123 : vector<16x16xf32> to vector<1x1x16x16xf32>
    tpu.vector_store %arg2[%c0_95, %c13, %c0_96, %c0_97], %126 {strides = array<i32>} : memref<1x16x16x16xf32, #tpu.memory_space<vmem>>, vector<1x1x16x16xf32>,
    %c14_i32 = arith.constant 14 : i32
    %127 = arith.addi %c14_i32, %0 : i32
    %c0_i32_98 = arith.constant 0 : i32
    %128 = arith.addi %127, %c0_i32_98 : i32
    %c15_i32_99 = arith.constant 15 : i32
    %129 = arith.subi %c15_i32_99, %128 : i32
    %c0_100 = arith.constant 0 : index
    %130 = arith.index_cast %129 : i32 to index
    %c0_101 = arith.constant 0 : index
    %131 = vector.load %arg1[%c0_100, %130, %c0_101] : memref<1x32x16xf32, #tpu.memory_space<vmem>>, vector<1x16x16xf32>
    %132 = vector.shape_cast %131 : vector<1x16x16xf32> to vector<16x16xf32>
    %c0_102 = arith.constant 0 : index
    %c14 = arith.constant 14 : index
    %c0_103 = arith.constant 0 : index
    %c0_104 = arith.constant 0 : index
    %133 = vector.load %arg2[%c0_102, %c14, %c0_103, %c0_104] : memref<1x16x16x16xf32, #tpu.memory_space<vmem>>, vector<1x1x16x16xf32>
    %134 = vector.shape_cast %133 : vector<1x1x16x16xf32> to vector<16x16xf32>
    %135 = vector.shape_cast %132 : vector<16x16xf32> to vector<1x1x16x16xf32>
    tpu.vector_store %arg2[%c0_102, %c14, %c0_103, %c0_104], %135 {strides = array<i32>} : memref<1x16x16x16xf32, #tpu.memory_space<vmem>>, vector<1x1x16x16xf32>,
    %c15_i32_105 = arith.constant 15 : i32
    %136 = arith.addi %c15_i32_105, %0 : i32
    %c0_i32_106 = arith.constant 0 : i32
    %137 = arith.addi %136, %c0_i32_106 : i32
    %c15_i32_107 = arith.constant 15 : i32
    %138 = arith.subi %c15_i32_107, %137 : i32
    %c0_108 = arith.constant 0 : index
    %139 = arith.index_cast %138 : i32 to index
    %c0_109 = arith.constant 0 : index
    %140 = vector.load %arg1[%c0_108, %139, %c0_109] : memref<1x32x16xf32, #tpu.memory_space<vmem>>, vector<1x16x16xf32>
    %141 = vector.shape_cast %140 : vector<1x16x16xf32> to vector<16x16xf32>
    %c0_110 = arith.constant 0 : index
    %c15 = arith.constant 15 : index
    %c0_111 = arith.constant 0 : index
    %c0_112 = arith.constant 0 : index
    %142 = vector.load %arg2[%c0_110, %c15, %c0_111, %c0_112] : memref<1x16x16x16xf32, #tpu.memory_space<vmem>>, vector<1x1x16x16xf32>
    %143 = vector.shape_cast %142 : vector<1x1x16x16xf32> to vector<16x16xf32>
    %144 = vector.shape_cast %141 : vector<16x16xf32> to vector<1x1x16x16xf32>
    tpu.vector_store %arg2[%c0_110, %c15, %c0_111, %c0_112], %144 {strides = array<i32>} : memref<1x16x16x16xf32, #tpu.memory_space<vmem>>, vector<1x1x16x16xf32>,
    return
  }
  func.func @transform_0(%arg0: i32) -> (i32, i32, i32) {
    %c0_i32 = arith.constant 0 : i32
    %c0_i32_0 = arith.constant 0 : i32
    %c0_i32_1 = arith.constant 0 : i32
    %c0_i32_2 = arith.constant 0 : i32
    return %c0_i32, %c0_i32_0, %c0_i32_1 : i32, i32, i32
  }
  func.func @transform_1(%arg0: i32) -> (i32, i32, i32, i32) {
    %c0_i32 = arith.constant 0 : i32
    %c0_i32_0 = arith.constant 0 : i32
    %c0_i32_1 = arith.constant 0 : i32
    %c0_i32_2 = arith.constant 0 : i32
    return %c0_i32, %c0_i32_0, %arg0, %c0_i32_1 : i32, i32, i32, i32
  }
}

</mosaic_0001>

<bundles_post_ra>
// kernel: tpu_custom_call.1
= control target key start
LH: loop header
LB: loop body
LE: loop exit
PB: predicated region body
PF: predicated region fallthrough
CT: control target
= control target key end

     0   :  { %vm13_vm0 = vcmask 130048   ;;  %s210_s30 = smov [#allocation2]   ;;  %s339_s0 = inlined_call_operand.vmem [shape: f32[1,32,16], index: 0, kind: input, shape index: {}]   ;;  %s340_s1 = inlined_call_operand.hbm [shape: f32[1,16,16,16], index: 1, kind: output, shape index: {}]  }
   0x1   :  { %v153_v0 = vld [vmem:[%s339_s0 + $0xf] sm:$0xff]  ;;  %v154_v1 = vld [vmem:[%s339_s0 + $0x17] sm:$0xff]  ;;  %s126_s2 = sshll.u32 %s210_s30, 4  ;;  %v169_v16 = vld [vmem:[%s339_s0 + $0x7] sm:$0xff]  ;;  %s127_s2 = int_to_ptr.vmem [resolvable:$true] %s126_s2 }
   0x2   :  { %v155_v2 = vld [vmem:[%s339_s0 + $0xe] sm:$0xff]  ;;  %14 = vst.msk [vmem:[#allocation2] sm:$0xff] %vm13_vm0, %v153_v0  ;;  %15 = vst.msk [vmem:[#allocation2 + $0x8] sm:$0xff] %vm13_vm0, %v154_v1  ;;  %v156_v3 = vld [vmem:[%s339_s0 + $0x16] sm:$0xff] }
   0x3   :  { %21 = vst.msk [vmem:[#allocation2 + $0x10] sm:$0xff] %vm13_vm0, %v155_v2  ;;  %v157_v4 = vld [vmem:[%s339_s0 + $0xd] sm:$0xff]  ;;  %v158_v5 = vld [vmem:[%s339_s0 + $0x15] sm:$0xff]  ;;  %71 = vst.msk [vmem:[#allocation2 + $0x88] sm:$0xff] %vm13_vm0, %v153_v0 }
   0x4   :  { %78 = vst.msk [vmem:[#allocation2 + $0x98] sm:$0xff] %vm13_vm0, %v155_v2  ;;  %22 = vst.msk [vmem:[#allocation2 + $0x18] sm:$0xff] %vm13_vm0, %v156_v3  ;;  %v159_v6 = vld [vmem:[%s339_s0 + $0xc] sm:$0xff]  ;;  %v160_v7 = vld [vmem:[%s339_s0 + $0x14] sm:$0xff] }
   0x5   :  { %28 = vst.msk [vmem:[#allocation2 + $0x20] sm:$0xff] %vm13_vm0, %v157_v4  ;;  %29 = vst.msk [vmem:[#allocation2 + $0x28] sm:$0xff] %vm13_vm0, %v158_v5  ;;  %v161_v8 = vld [vmem:[%s339_s0 + $0xb] sm:$0xff]  ;;  %v162_v9 = vld [vmem:[%s339_s0 + $0x13] sm:$0xff] }
   0x6   :  { %85 = vst.msk [vmem:[#allocation2 + $0xa8] sm:$0xff] %vm13_vm0, %v157_v4  ;;  %35 = vst.msk [vmem:[#allocation2 + $0x30] sm:$0xff] %vm13_vm0, %v159_v6  ;;  %v163_v10 = vld [vmem:[%s339_s0 + $0xa] sm:$0xff]  ;;  %v164_v11 = vld [vmem:[%s339_s0 + $0x12] sm:$0xff] }
   0x7   :  { %36 = vst.msk [vmem:[#allocation2 + $0x38] sm:$0xff] %vm13_vm0, %v160_v7  ;;  %42 = vst.msk [vmem:[#allocation2 + $0x40] sm:$0xff] %vm13_vm0, %v161_v8  ;;  %v165_v12 = vld [vmem:[%s339_s0 + $0x9] sm:$0xff]  ;;  %v166_v13 = vld [vmem:[%s339_s0 + $0x11] sm:$0xff] }
   0x8   :  { %92 = vst.msk [vmem:[#allocation2 + $0xb8] sm:$0xff] %vm13_vm0, %v159_v6  ;;  %99 = vst.msk [vmem:[#allocation2 + $0xc8] sm:$0xff] %vm13_vm0, %v161_v8  ;;  %v167_v14 = vld [vmem:[%s339_s0 + $0x8] sm:$0xff]  ;;  %v168_v15 = vld [vmem:[%s339_s0 + $0x10] sm:$0xff] }
   0x9   :  { %43 = vst.msk [vmem:[#allocation2 + $0x48] sm:$0xff] %vm13_vm0, %v162_v9  ;;  %49 = vst.msk [vmem:[#allocation2 + $0x50] sm:$0xff] %vm13_vm0, %v163_v10  ;;  %v171_v17 = vld [vmem:[%s339_s0 + $0x6] sm:$0xff] }
   0xa   :  { %50 = vst.msk [vmem:[#allocation2 + $0x58] sm:$0xff] %vm13_vm0, %v164_v11  ;;  %106 = vst.msk [vmem:[#allocation2 + $0xd8] sm:$0xff] %vm13_vm0, %v163_v10  ;;  %v173_v18 = vld [vmem:[%s339_s0 + $0x5] sm:$0xff] }
   0xb   :  { %56 = vst.msk [vmem:[#allocation2 + $0x60] sm:$0xff] %vm13_vm0, %v165_v12  ;;  %57 = vst.msk [vmem:[#allocation2 + $0x68] sm:$0xff] %vm13_vm0, %v166_v13  ;;  %v175_v19 = vld [vmem:[%s339_s0 + $0x4] sm:$0xff] }
   0xc   :  { %63 = vst.msk [vmem:[#allocation2 + $0x70] sm:$0xff] %vm13_vm0, %v167_v14  ;;  %113 = vst.msk [vmem:[#allocation2 + $0xe8] sm:$0xff] %vm13_vm0, %v165_v12  ;;  %v177_v20 = vld [vmem:[%s339_s0 + $0x3] sm:$0xff] }
   0xd   :  { %120 = vst.msk [vmem:[#allocation2 + $0xf8] sm:$0xff] %vm13_vm0, %v167_v14  ;;  %64 = vst.msk [vmem:[#allocation2 + $0x78] sm:$0xff] %vm13_vm0, %v168_v15  ;;  %v179_v21 = vld [vmem:[%s339_s0 + $0x2] sm:$0xff] }
   0xe   :  { %70 = vst.msk [vmem:[#allocation2 + $0x80] sm:$0xff] %vm13_vm0, %v169_v16  ;;  %77 = vst.msk [vmem:[#allocation2 + $0x90] sm:$0xff] %vm13_vm0, %v171_v17  ;;  %v181_v22 = vld [vmem:[%s339_s0 + $0x1] sm:$0xff] }
   0xf   :  { %84 = vst.msk [vmem:[#allocation2 + $0xa0] sm:$0xff] %vm13_vm0, %v173_v18  ;;  %91 = vst.msk [vmem:[#allocation2 + $0xb0] sm:$0xff] %vm13_vm0, %v175_v19  ;;  %v116_v23 = vld [vmem:[%s339_s0] sm:$0xff] }
  0x10   :  { %98 = vst.msk [vmem:[#allocation2 + $0xc0] sm:$0xff] %vm13_vm0, %v177_v20  ;;  %105 = vst.msk [vmem:[#allocation2 + $0xd0] sm:$0xff] %vm13_vm0, %v179_v21 }
  0x11   :  { %112 = vst.msk [vmem:[#allocation2 + $0xe0] sm:$0xff] %vm13_vm0, %v181_v22  ;;  %119 = vst.msk [vmem:[#allocation2 + $0xf0] sm:$0xff] %vm13_vm0, %v116_v23 }
  0x12   :  { %6 = vsyncpa [#allocation3], 0  ;;  %s186_s27 = scalar_lea.vmem %s127_s2, 4096  ;;  %p191_p1 = scmp.lt.s32.totalorder %s127_s2, %s127_s2 }
  0x13   :  { %p187_p0 = scmp.ne.s32.totalorder %s127_s2, %s186_s27  ;;  %p192_p2 = scmp.lt.s32.totalorder %s186_s27, %s186_s27 }
  0x15   :  { %p193_p3 = por %p192_p2, %p191_p1 }
  0x17   :  { %p194_p4 = pnand %p193_p3, %p187_p0 }
  0x19   :  { %197 = shalt.err (!%p194_p4)
}
  0x1a   :  { %s198_s30 = scalar_lea.hbm %s340_s1, 4096 }
  0x1b   :  { %p199_p5 = scmp.ne.s32.totalorder %s340_s1, %s198_s30  ;;  %p202_p6 = scmp.lt.u32.totalorder %s198_s30, %s340_s1 }
  0x1d   :  { %p204_p7 = pnand %p202_p6, %p199_p5 }
  0x1f   :  { %207 = shalt.err (!%p204_p7)
}
  0x20   :  { %s211_s6 = smov 128   ;;  %s212_s7 = smov 8  }
  0x21   :  { %132 = dma.vmem_to_hbm [thread:$0]  %s127_s2, 4096, %s340_s1, [#allocation3], %s211_s6, %s211_s6, %s212_s7  }
  0x22   :  { %208 = dma.done.wait [#allocation3], 4096  }
  0x23   :  { %209 = vsyncadd [#allocation3], 4294963200 }
  0x24   :  { %136 = vsyncpa [#allocation3], 1 }

</bundles_post_ra>
